<compile_context>
chip_gen: v7x
topology: tpu7x:2x2x1
jax: 0.10.0
libtpu: 0.0.40
codegen_flags: <defaults>
</compile_context>

<pallas_src>
import functools

import jax
import jax.numpy as jnp
from jax.experimental import pallas as pl
from jax.experimental.pallas import tpu as pltpu


def _round_up(x: int, m: int) -> int:
    return ((x + m - 1) // m) * m


def _attention_kernel(x_ref, w_ref, o_ref):
    # x_ref: (block_b, S, H)   w_ref: (1, H)   o_ref: (block_b, H)
    x = x_ref[...].astype(jnp.float32)            # (Bt, S, H)
    w = w_ref[...].astype(jnp.float32)            # (1, H) -> broadcasts over (S, H)

    # scores[b, s] = <x[b, s, :], w>   (VPU multiply + XLU lane reduce; no N=1 MXU matmul)
    scores = jnp.sum(x * w, axis=-1)              # (Bt, S), S on the lane axis

    # softmax over the sequence axis (PyTorch dim=1).  Bias omitted: shift-invariant.
    m = jnp.max(scores, axis=-1, keepdims=True)   # (Bt, 1)
    e = jnp.exp(scores - m)                       # (Bt, S)
    inv_denom = pl.reciprocal(jnp.sum(e, axis=-1, keepdims=True), approx=True)  # (Bt, 1)

    # attended[b, h] = sum_s softmax(scores)[b, s] * x[b, s, h]
    acc = jnp.sum(e[:, :, None] * x, axis=1)      # (Bt, H)
    o_ref[...] = (acc * inv_denom).astype(o_ref.dtype)


def _choose_block_b(B: int, S: int, H: int) -> int:
    # Keep double-buffered input tiles small vs. scoped VMEM on every generation
    # (v7x has only 64 MiB physical / 32 MiB default scoped VMEM): budget ~2 MiB
    # per input buffer.  block_b is a multiple of 8 (sublane-dense output block),
    # capped at 64 so large batches still produce >=2 grid steps for megacore.
    bytes_per_row = S * H * 4
    cap = max(8, (2 * 1024 * 1024) // max(bytes_per_row, 1))
    cap = max(8, (cap // 8) * 8)
    return min(cap, 64, _round_up(B, 8))


@functools.partial(jax.jit, static_argnames=("block_b",))
def attention_layer(lstm_output, weight, bias=None, *, block_b=None):
    """lstm_output: (B, S, H); weight: (1, H) (PyTorch Linear layout); bias: (1,) (unused:
    softmax is shift-invariant, so the Linear bias cancels exactly)."""
    B, S, H = lstm_output.shape
    if block_b is None:
        block_b = _choose_block_b(B, S, H)
    B_pad = _round_up(B, block_b)

    x = lstm_output
    if B_pad != B:
        # Zero-padded rows give uniform softmax over zeros -> zero output rows,
        # sliced off below; no NaNs.
        x = jnp.pad(x, ((0, B_pad - B), (0, 0), (0, 0)))

    w_row = weight.reshape(1, H).astype(lstm_output.dtype)

    out = pl.pallas_call(
        _attention_kernel,
        out_shape=jax.ShapeDtypeStruct((B_pad, H), lstm_output.dtype),
        grid_spec=pltpu.PrefetchScalarGridSpec(
            num_scalar_prefetch=0,
            grid=(B_pad // block_b,),
            in_specs=[
                pl.BlockSpec((block_b, S, H), lambda i: (i, 0, 0)),
                pl.BlockSpec((1, H), lambda i: (0, 0)),
            ],
            out_specs=pl.BlockSpec((block_b, H), lambda i: (i, 0)),
        ),
        compiler_params=pltpu.CompilerParams(
            dimension_semantics=("parallel",)),
        cost_estimate=pl.CostEstimate(
            flops=4 * B_pad * S * H,
            transcendentals=B_pad * S,
            bytes_accessed=4 * B_pad * S * H + 4 * B_pad * H + 4 * H),
    )(x, w_row)

    return out[:B]


def _reference(x, weight, bias):
    scores = jnp.einsum("bsh,oh->bso", x, weight) + bias      # (B, S, 1)
    w_sm = jax.nn.softmax(scores, axis=1)
    return jnp.sum(w_sm * x, axis=1)                          # (B, H)


if __name__ == "__main__":
    B, S, H = 2, 8, 32
    key = jax.random.PRNGKey(0)
    k_x, k_w, k_b = jax.random.split(key, 3)

    # PyTorch Linear default init: U(-1/sqrt(H), 1/sqrt(H))
    bound = 1.0 / (H ** 0.5)
    weight = jax.random.uniform(k_w, (1, H), jnp.float32, -bound, bound)
    bias = jax.random.uniform(k_b, (1,), jnp.float32, -bound, bound)
    x = jax.random.normal(k_x, (B, S, H), jnp.float32)

    out = jax.block_until_ready(attention_layer(x, weight, bias))
    ref = _reference(x, weight, bias)
    assert out.shape == (B, H)
    assert jnp.allclose(out, ref, atol=2e-3, rtol=2e-3), float(jnp.max(jnp.abs(out - ref)))

    # Second check: batch not a multiple of the block -> padding + multi-step grid.
    B2 = 160
    x2 = jax.random.normal(jax.random.PRNGKey(1), (B2, S, H), jnp.float32)
    out2 = jax.block_until_ready(attention_layer(x2, weight, bias))
    ref2 = _reference(x2, weight, bias)
    assert out2.shape == (B2, H)
    assert jnp.allclose(out2, ref2, atol=2e-3, rtol=2e-3), float(jnp.max(jnp.abs(out2 - ref2)))

    print("KERNEL_OK")
</pallas_src>

<mosaic_0001>
module attributes {stable_mosaic.version = 11 : i64} {
  func.func @_attention_kernel(%arg0: i32, %arg1: memref<8x8x32xf32, #tpu.memory_space<vmem>>, %arg2: memref<1x32xf32, #tpu.memory_space<vmem>>, %arg3: memref<8x32xf32, #tpu.memory_space<vmem>>) attributes {dimension_semantics = [#tpu.dimension_semantics<parallel>], iteration_bounds = array<i64: 1>, scalar_prefetch = 0 : i64, scratch_operands = 0 : i64, tpu.core_type = #tpu.core_type<tc>, window_params = [{transform_indices = @transform_0, window_bounds = array<i64: 8, 8, 32>}, {pipeline_mode = #tpu.pipeline_mode<synchronous>, transform_indices = @transform_1, window_bounds = array<i64: 1, 32>}, {transform_indices = @transform_2, window_bounds = array<i64: 8, 32>}]} {
    %c0 = arith.constant 0 : index
    %c0_0 = arith.constant 0 : index
    %c0_1 = arith.constant 0 : index
    %0 = vector.load %arg1[%c0, %c0_0, %c0_1] : memref<8x8x32xf32, #tpu.memory_space<vmem>>, vector<8x8x32xf32>
    %c0_2 = arith.constant 0 : index
    %c0_3 = arith.constant 0 : index
    %1 = vector.load %arg2[%c0_2, %c0_3] : memref<1x32xf32, #tpu.memory_space<vmem>>, vector<1x32xf32>
    %2 = vector.shape_cast %1 : vector<1x32xf32> to vector<1x1x32xf32>
    %3 = vector.broadcast %2 : vector<1x1x32xf32> to vector<8x8x32xf32>
    %4 = arith.mulf %0, %3 : vector<8x8x32xf32>
    %cst = arith.constant dense<0.000000e+00> : vector<8x8xf32>
    %5 = vector.multi_reduction <add>, %4, %cst [2] : vector<8x8x32xf32> to vector<8x8xf32>
    %cst_4 = arith.constant dense<0xFF800000> : vector<8xf32>
    %6 = vector.multi_reduction <maximumf>, %5, %cst_4 [1] : vector<8x8xf32> to vector<8xf32>
    %7 = vector.shape_cast %6 : vector<8xf32> to vector<8x1xf32>
    %8 = vector.broadcast %7 : vector<8x1xf32> to vector<8x8xf32>
    %9 = arith.subf %5, %8 : vector<8x8xf32>
    %10 = math.exp %9 : vector<8x8xf32>
    %cst_5 = arith.constant dense<0.000000e+00> : vector<8xf32>
    %11 = vector.multi_reduction <add>, %10, %cst_5 [1] : vector<8x8xf32> to vector<8xf32>
    %12 = vector.shape_cast %11 : vector<8xf32> to vector<8x1xf32>
    %13 = tpu.reciprocal %12 {approx = true} : vector<8x1xf32> -> vector<8x1xf32>
    %14 = vector.shape_cast %10 : vector<8x8xf32> to vector<8x8x1xf32>
    %15 = vector.broadcast %14 : vector<8x8x1xf32> to vector<8x8x32xf32>
    %16 = arith.mulf %15, %0 : vector<8x8x32xf32>
    %cst_6 = arith.constant dense<0.000000e+00> : vector<8x32xf32>
    %17 = vector.multi_reduction <add>, %16, %cst_6 [1] : vector<8x8x32xf32> to vector<8x32xf32>
    %18 = vector.broadcast %13 : vector<8x1xf32> to vector<8x32xf32>
    %19 = arith.mulf %17, %18 : vector<8x32xf32>
    %c0_7 = arith.constant 0 : index
    %c0_8 = arith.constant 0 : index
    %20 = vector.load %arg3[%c0_7, %c0_8] : memref<8x32xf32, #tpu.memory_space<vmem>>, vector<8x32xf32>
    tpu.vector_store %arg3[%c0_7, %c0_8], %19 {strides = array<i32>} : memref<8x32xf32, #tpu.memory_space<vmem>>, vector<8x32xf32>,
    return
  }
  func.func @transform_0(%arg0: i32) -> (i32, i32, i32) {
    %c0_i32 = arith.constant 0 : i32
    %c0_i32_0 = arith.constant 0 : i32
    %c0_i32_1 = arith.constant 0 : i32
    return %arg0, %c0_i32, %c0_i32_0 : i32, i32, i32
  }
  func.func @transform_1(%arg0: i32) -> (i32, i32) {
    %c0_i32 = arith.constant 0 : i32
    %c0_i32_0 = arith.constant 0 : i32
    %c0_i32_1 = arith.constant 0 : i32
    return %c0_i32, %c0_i32_0 : i32, i32
  }
  func.func @transform_2(%arg0: i32) -> (i32, i32) {
    %c0_i32 = arith.constant 0 : i32
    %c0_i32_0 = arith.constant 0 : i32
    return %arg0, %c0_i32 : i32, i32
  }
}

</mosaic_0001>

<bundles_post_ra>
// kernel: attention_layer.1
= control target key start
LH: loop header
LB: loop body
LE: loop exit
PB: predicated region body
PF: predicated region fallthrough
CT: control target
= control target key end

     0   :  { %vm34_vm0 = vcmask 261120   ;;  %v67_v25 = vlaneseq  ;;  %vm101_vm1 = vcmask 1041409   ;;  %vm103_vm2 = vcmask 1042434   ;;  %s554_s0 = inlined_call_operand.vmem [shape: f32[8,8,32], index: 0, kind: input, shape index: {}]   ;;  %s555_s1 = inlined_call_operand.vmem [shape: f32[1,32], index: 1, kind: input, shape index: {}]   ;;  %s556_s2 = inlined_call_operand.vmem [shape: f32[8,32], index: 2, kind: output, shape index: {}]  }
   0x1   :  { %v426_v0 = vld [vmem:[%s554_s0] sm:$0xff]  ;;  %v434_v2 = vld [vmem:[%s554_s0 + $0x10] sm:$0xff]  ;;  %v441_v5 = vld [vmem:[%s554_s0 + $0x8] sm:$0xff]  ;;  %vm105_vm3 = vcmask 1043459   ;;  %vm107_vm4 = vcmask 1044484   ;;  %vm109_vm5 = vcmask 1045509  }
   0x2   :  { %v385_v1 = vld [vmem:[%s555_s1] ss:$0 sm:$0xff]  ;;  %v446_v6 = vld [vmem:[%s554_s0 + $0x18] sm:$0xff]  ;;  %v458_v10 = vld [vmem:[%s554_s0 + $0x28] sm:$0xff]  ;;  %v68_v26 = vand.u32 127, %v67_v25  ;;  %v482_v27 = vshrl.u32 %v67_v25, 7 }
   0x3   :  { %v26_v3 = vmul.f32 %v385_v1, %v426_v0  ;;  %v28_v4 = vmul.f32 %v385_v1, %v434_v2  ;;  %v27_v7 = vmul.f32 %v385_v1, %v441_v5  ;;  %v29_v8 = vmul.f32 %v385_v1, %v446_v6  ;;  %v453_v9 = vld [vmem:[%s554_s0 + $0x20] sm:$0xff]  ;;  %v469_v17 = vld [vmem:[%s554_s0 + $0x30] sm:$0xff]  ;;  %v474_v18 = vld [vmem:[%s554_s0 + $0x38] sm:$0xff] }
   0x4   :  { %v30_v15 = vmul.f32 %v385_v1, %v453_v9  ;;  %v31_v16 = vmul.f32 %v385_v1, %v458_v10  ;;  %v32_v21 = vmul.f32 %v385_v1, %v469_v17  ;;  %v33_v22 = vmul.f32 %v385_v1, %v474_v18 }
   0x5   :  { %v35_v11 = vsel %vm34_vm0, %v26_v3, 0.0  ;;  %v41_v12 = vsel %vm34_vm0, %v28_v4, 0.0  ;;  %v38_v13 = vsel %vm34_vm0, %v27_v7, 0.0  ;;  %v44_v14 = vsel %vm34_vm0, %v29_v8, 0.0 }
   0x6   :  { %36 = vadd.xlane.f32.xlu0 %v35_v11  ;;  %42 = vadd.xlane.f32.xlu1 %v41_v12  ;;  %v47_v19 = vsel %vm34_vm0, %v30_v15, 0.0  ;;  %v50_v20 = vsel %vm34_vm0, %v31_v16, 0.0  ;;  %v53_v23 = vsel %vm34_vm0, %v32_v21, 0.0  ;;  %v56_v24 = vsel %vm34_vm0, %v33_v22, 0.0 }
   0x7   :  { %v485_v30 = vsub.s32 %v68_v26, %v482_v27  ;;  %vm111_vm6 = vcmask 1046534   ;;  %vm113_vm7 = vcmask 1047559   ;;  %vm116_vm8 = vcmask 64512  }
   0x8   :  { %v407_v53 = vmov 0   ;;  %v123_v54 = vsub.s32 0, %v482_v27  ;;  %v127_v55 = vsub.s32 1, %v482_v27  ;;  %v131_v56 = vsub.s32 2, %v482_v27 }
   0x9   :  { %388 = vset.pattern.permute.xlu0 %v407_v53  ;;  %387 = vset.pattern.permute.xlu1 %v407_v53  ;;  %v135_v57 = vsub.s32 3, %v482_v27  ;;  %v139_v62 = vsub.s32 4, %v482_v27  ;;  %v143_v11 = vsub.s32 5, %v482_v27  ;;  %v147_v15 = vsub.s32 6, %v482_v27 }
   0xa   :  { %39 = vadd.xlane.f32.xlu0 %v38_v13  ;;  %45 = vadd.xlane.f32.xlu1 %v44_v14  ;;  %v151_v21 = vsub.s32 7, %v482_v27 }
   0xe   :  { %48 = vadd.xlane.f32.xlu0 %v47_v19  ;;  %51 = vadd.xlane.f32.xlu1 %v50_v20 }
  0x12   :  { %54 = vadd.xlane.f32.xlu0 %v53_v23  ;;  %57 = vadd.xlane.f32.xlu1 %v56_v24 }
  0x93   :  { %v37_v28 = vpop.xlane.xlu0 %36  ;;  %v43_v29 = vpop.xlane.xlu1 %42 }
  0x94   :  { %v72_v33 = vrot.slane %v37_v28, %v485_v30  ;;  %v80_v36 = vrot.slane %v43_v29, %v485_v30 }
  0x97   :  { %v40_v31 = vpop.xlane.xlu0 %39  ;;  %v46_v32 = vpop.xlane.xlu1 %45 }
  0x98   :  { %v76_v34 = vrot.slane %v40_v31, %v485_v30  ;;  %v84_v35 = vrot.slane %v46_v32, %v485_v30 }
  0x9a   :  { %v102_v37 = vsel %vm101_vm1, %v76_v34, %v72_v33 }
  0x9b   :  { %v104_v38 = vsel %vm103_vm2, %v80_v36, %v102_v37  ;;  %v49_v39 = vpop.xlane.xlu0 %48  ;;  %v52_v40 = vpop.xlane.xlu1 %51 }
  0x9c   :  { %v106_v41 = vsel %vm105_vm3, %v84_v35, %v104_v38  ;;  %v88_v42 = vrot.slane %v49_v39, %v485_v30  ;;  %v92_v43 = vrot.slane %v52_v40, %v485_v30 }
  0x9e   :  { %v108_v44 = vsel %vm107_vm4, %v88_v42, %v106_v41 }
  0x9f   :  { %v55_v45 = vpop.xlane.xlu0 %54  ;;  %v58_v46 = vpop.xlane.xlu1 %57  ;;  %v110_v49 = vsel %vm109_vm5, %v92_v43, %v108_v44 }
  0xa0   :  { %v96_v47 = vrot.slane %v55_v45, %v485_v30  ;;  %v100_v48 = vrot.slane %v58_v46, %v485_v30 }
  0xa2   :  { %v112_v50 = vsel %vm111_vm6, %v96_v47, %v110_v49 }
  0xa3   :  { %v114_v51 = vsel %vm113_vm7, %v100_v48, %v112_v50 }
  0xa4   :  { %v117_v52 = vsel %vm116_vm8, %v114_v51, -inf }
  0xa5   :  { %118 = vmax.xlane.f32.xlu0 %v117_v52 }
 0x132   :  { %v119_v58 = vpop.xlane.xlu0 %118 }
 0x133   :  { %v124_v59 = vrot.slane %v119_v58, %v123_v54  ;;  %v128_v60 = vrot.slane %v119_v58, %v127_v55  ;;  %v132_v61 = vrot.slane %v119_v58, %v131_v56  ;;  %v136_v63 = vrot.slane %v119_v58, %v135_v57 }
 0x134   :  { %v140_v12 = vrot.slane %v119_v58, %v139_v62  ;;  %v144_v16 = vrot.slane %v119_v58, %v143_v11  ;;  %v148_v22 = vrot.slane %v119_v58, %v147_v15 }
 0x135   :  { %v161_v1 = vsub.f32 %v37_v28, %v124_v59  ;;  %v162_v3 = vsub.f32 %v40_v31, %v128_v60  ;;  %v163_v4 = vsub.f32 %v43_v29, %v132_v61  ;;  %v164_v13 = vsub.f32 %v46_v32, %v136_v63 }
 0x136   :  { %v165_v19 = vsub.f32 %v49_v39, %v140_v12  ;;  %v166_v23 = vsub.f32 %v52_v40, %v144_v16  ;;  %v152_v28 = vrot.slane %v119_v58, %v151_v21  ;;  %v167_v29 = vsub.f32 %v55_v45, %v148_v22 }
 0x137   :  { %v169_v7 = vmul.f32 1.442695, %v161_v1  ;;  %v171_v8 = vmul.f32 1.442695, %v162_v3  ;;  %v173_v14 = vmul.f32 1.442695, %v163_v4 }
 0x138   :  { %v175_v20 = vmul.f32 1.442695, %v164_v13  ;;  %v177_v24 = vmul.f32 1.442695, %v165_v19  ;;  %v179_v31 = vmul.f32 1.442695, %v166_v23  ;;  %v168_v33 = vsub.f32 %v58_v46, %v152_v28 }
 0x139   :  { %389 = vpow2.f32 %v169_v7  ;;  %v181_v34 = vmul.f32 1.442695, %v167_v29 }
 0x13a   :  { %391 = vpow2.f32 %v171_v8  ;;  %v183_v27 = vmul.f32 1.442695, %v168_v33 }
 0x13b   :  { %393 = vpow2.f32 %v173_v14 }
 0x13c   :  { %395 = vpow2.f32 %v175_v20 }
 0x13d   :  { %397 = vpow2.f32 %v177_v24 }
 0x13e   :  { %399 = vpow2.f32 %v179_v31 }
 0x13f   :  { %401 = vpow2.f32 %v181_v34 }
 0x140   :  { %403 = vpow2.f32 %v183_v27 }
 0x143   :  { %v390_v25 = vpop.eup %389 }
 0x144   :  { %v392_v26 = vpop.eup %391  ;;  %194 = vperm.xlu1 %387, %v390_v25  }
 0x145   :  { %197 = vperm.xlu0 %388, %v392_v26   ;;  %v394_v32 = vpop.eup %393 }
 0x146   :  { %v396_v35 = vpop.eup %395 }
 0x147   :  { %v398_v36 = vpop.eup %397 }
 0x148   :  { %200 = vperm.xlu1 %387, %v394_v32   ;;  %v400_v37 = vpop.eup %399 }
 0x149   :  { %v402_v38 = vpop.eup %401 }
 0x14a   :  { %v404_v39 = vpop.eup %403 }
 0x14c   :  { %203 = vperm.xlu1 %387, %v396_v35  }
 0x150   :  { %206 = vperm.xlu1 %387, %v398_v36  }
 0x154   :  { %209 = vperm.xlu1 %387, %v400_v37  }
 0x158   :  { %212 = vperm.xlu1 %387, %v402_v38  }
 0x15c   :  { %215 = vperm.xlu1 %387, %v404_v39  }
 0x1c3   :  { %v195_v40 = vpop.permute.xlu1 %194 }
 0x1c4   :  { %v198_v44 = vpop.permute.xlu0 %197  ;;  %v220_v47 = vrot.slane %v195_v40, %v485_v30  ;;  %v269_v3 = vmul.f32 %v195_v40, %v426_v0 }
 0x1c5   :  { %v224_v46 = vrot.slane %v198_v44, %v485_v30  ;;  %v270_v1 = vmul.f32 %v198_v44, %v441_v5 }
 0x1c6   :  { %v277_v12 = vsel %vm34_vm0, %v269_v3, 0.0 }
 0x1c7   :  { %v201_v41 = vpop.permute.xlu1 %200  ;;  %v249_v52 = vsel %vm101_vm1, %v224_v46, %v220_v47  ;;  %v284_v11 = vsel %vm34_vm0, %v270_v1, 0.0 }
 0x1c8   :  { %v228_v48 = vrot.slane %v201_v41, %v485_v30  ;;  %v271_v4 = vmul.f32 %v201_v41, %v434_v2  ;;  %v285_v15 = vrot.slane %v284_v11, 4  ;;  %v278_v2 = vrot.slane %v277_v12, 4 }
 0x1ca   :  { %v250_v54 = vsel %vm103_vm2, %v228_v48, %v249_v52  ;;  %v291_v13 = vsel %vm34_vm0, %v271_v4, 0.0  ;;  %v286_v23 = vadd.f32 %v285_v15, %v284_v11  ;;  %v279_v24 = vadd.f32 %v278_v2, %v277_v12 }
 0x1cb   :  { %v204_v42 = vpop.permute.xlu1 %203  ;;  %v292_v16 = vrot.slane %v291_v13, 4 }
 0x1cc   :  { %v232_v49 = vrot.slane %v204_v42, %v485_v30  ;;  %v272_v7 = vmul.f32 %v204_v42, %v446_v6  ;;  %v287_v31 = vrot.slane %v286_v23, 2  ;;  %v280_v32 = vrot.slane %v279_v24, 2 }
 0x1cd   :  { %v293_v25 = vadd.f32 %v292_v16, %v291_v13 }
 0x1ce   :  { %v251_v56 = vsel %vm105_vm3, %v232_v49, %v250_v54  ;;  %v298_v14 = vsel %vm34_vm0, %v272_v7, 0.0  ;;  %v288_v39 = vadd.f32 %v287_v31, %v286_v23  ;;  %v281_v40 = vadd.f32 %v280_v32, %v279_v24 }
 0x1cf   :  { %v207_v43 = vpop.permute.xlu1 %206  ;;  %v294_v33 = vrot.slane %v293_v25, 2 }
 0x1d0   :  { %v236_v50 = vrot.slane %v207_v43, %v485_v30  ;;  %v273_v8 = vmul.f32 %v207_v43, %v453_v9  ;;  %v289_v47 = vrot.slane %v288_v39, 1  ;;  %v282_v48 = vrot.slane %v281_v40, 1 }
 0x1d1   :  { %v295_v41 = vadd.f32 %v294_v33, %v293_v25 }
 0x1d2   :  { %v252_v57 = vsel %vm107_vm4, %v236_v50, %v251_v56  ;;  %v305_v6 = vsel %vm34_vm0, %v273_v8, 0.0  ;;  %v283_v56 = vadd.f32 %v282_v48, %v281_v40 }
 0x1d3   :  { %v210_v45 = vpop.permute.xlu1 %209  ;;  %v306_v21 = vrot.slane %v305_v6, 4  ;;  %v296_v49 = vrot.slane %v295_v41, 1 }
 0x1d4   :  { %v240_v53 = vrot.slane %v210_v45, %v485_v30 }
 0x1d5   :  { %v307_v28 = vadd.f32 %v306_v21, %v305_v6 }
 0x1d6   :  { %v253_v60 = vsel %vm109_vm5, %v240_v53, %v252_v57 }
 0x1d7   :  { %v213_v51 = vpop.permute.xlu1 %212  ;;  %v308_v37 = vrot.slane %v307_v28, 2 }
 0x1d8   :  { %v244_v55 = vrot.slane %v213_v51, %v485_v30  ;;  %v275_v5 = vmul.f32 %v213_v51, %v469_v17 }
 0x1da   :  { %v254_v61 = vsel %vm111_vm6, %v244_v55, %v253_v60  ;;  %v319_v19 = vsel %vm34_vm0, %v275_v5, 0.0  ;;  %v290_v55 = vadd.f32 %v289_v47, %v288_v39 }
 0x1db   :  { %v216_v58 = vpop.permute.xlu1 %215  ;;  %v320_v26 = vrot.slane %v319_v19, 4 }
 0x1dc   :  { %v248_v59 = vrot.slane %v216_v58, %v485_v30  ;;  %v274_v30 = vmul.f32 %v210_v45, %v458_v10  ;;  %v276_v0 = vmul.f32 %v216_v58, %v474_v18  ;;  %v299_v10 = vrot.slane %v298_v14, 4 }
 0x1dd   :  { %v321_v35 = vadd.f32 %v320_v26, %v319_v19  ;;  %v309_v45 = vadd.f32 %v308_v37, %v307_v28  ;;  %v297_v58 = vadd.f32 %v296_v49, %v295_v41 }
 0x1de   :  { %v255_v62 = vsel %vm113_vm7, %v248_v59, %v254_v61  ;;  %v312_v9 = vsel %vm34_vm0, %v274_v30, 0.0  ;;  %v326_v20 = vsel %vm34_vm0, %v276_v0, 0.0  ;;  %v300_v17 = vadd.f32 %v299_v10, %v298_v14 }
 0x1df   :  { %v257_v63 = vsel %vm116_vm8, %v255_v62, 0.0  ;;  %v313_v22 = vrot.slane %v312_v9, 4  ;;  %v327_v18 = vrot.slane %v326_v20, 4  ;;  %v322_v43 = vrot.slane %v321_v35, 2 }
 0x1e0   :  { %258 = vadd.xlane.f32.xlu1 %v257_v63  ;;  %v301_v34 = vrot.slane %v300_v17, 2  ;;  %v310_v53 = vrot.slane %v309_v45, 1 }
 0x1e1   :  { %v314_v29 = vadd.f32 %v313_v22, %v312_v9  ;;  %v328_v27 = vadd.f32 %v327_v18, %v326_v20  ;;  %v323_v51 = vadd.f32 %v322_v43, %v321_v35 }
 0x1e2   :  { %v302_v42 = vadd.f32 %v301_v34, %v300_v17  ;;  %v311_v4 = vadd.f32 %v310_v53, %v309_v45 }
 0x1e3   :  { %v315_v38 = vrot.slane %v314_v29, 2  ;;  %v329_v44 = vrot.slane %v328_v27, 2  ;;  %v324_v60 = vrot.slane %v323_v51, 1 }
 0x1e4   :  { %v303_v50 = vrot.slane %v302_v42, 1 }
 0x1e5   :  { %v316_v46 = vadd.f32 %v315_v38, %v314_v29  ;;  %v330_v52 = vadd.f32 %v329_v44, %v328_v27  ;;  %v325_v5 = vadd.f32 %v324_v60, %v323_v51 }
 0x1e6   :  { %v304_v59 = vadd.f32 %v303_v50, %v302_v42 }
 0x1e7   :  { %v317_v54 = vrot.slane %v316_v46, 1  ;;  %v331_v61 = vrot.slane %v330_v52, 1 }
 0x1e9   :  { %v318_v7 = vadd.f32 %v317_v54, %v316_v46  ;;  %v332_v0 = vadd.f32 %v331_v61, %v330_v52 }
 0x26d   :  { %v259_v36 = vpop.xlane.xlu1 %258 }
 0x26e   :  { %405 = vrcp.f32 %v259_v36 }
 0x278   :  { %v406_v57 = vpop.eup %405 }
 0x279   :  { %v334_v62 = vrot.slane %v406_v57, 1  ;;  %v335_v63 = vrot.slane %v406_v57, 2  ;;  %v336_v1 = vrot.slane %v406_v57, 3  ;;  %v337_v3 = vrot.slane %v406_v57, 4 }
 0x27a   :  { %v338_v8 = vrot.slane %v406_v57, 5  ;;  %v339_v30 = vrot.slane %v406_v57, 6  ;;  %v340_v11 = vrot.slane %v406_v57, 7  ;;  %v349_v2 = vmul.f32 %v406_v57, %v283_v56 }
 0x27b   :  { %v350_v12 = vmul.f32 %v334_v62, %v290_v55  ;;  %v351_v13 = vmul.f32 %v335_v63, %v297_v58  ;;  %v352_v14 = vmul.f32 %v336_v1, %v304_v59  ;;  %v353_v15 = vmul.f32 %v337_v3, %v311_v4 }
 0x27c   :  { %v354_v6 = vmul.f32 %v338_v8, %v318_v7  ;;  %v355_v10 = vmul.f32 %v339_v30, %v325_v5  ;;  %v356_v19 = vmul.f32 %v340_v11, %v332_v0 }
 0x27d   :  { %v365_v9 = vrot.slane %v350_v12, 7  ;;  %v367_v16 = vrot.slane %v351_v13, 6  ;;  %v369_v21 = vrot.slane %v352_v14, 5  ;;  %v371_v23 = vrot.slane %v353_v15, 4 }
 0x27e   :  { %v373_v25 = vrot.slane %v354_v6, 3  ;;  %v375_v26 = vrot.slane %v355_v10, 2  ;;  %v377_v28 = vrot.slane %v356_v19, 1 }
 0x27f   :  { %v366_v20 = vsel %vm101_vm1, %v365_v9, %v349_v2 }
 0x280   :  { %v368_v22 = vsel %vm103_vm2, %v367_v16, %v366_v20 }
 0x281   :  { %v370_v24 = vsel %vm105_vm3, %v369_v21, %v368_v22 }
 0x282   :  { %v372_v17 = vsel %vm107_vm4, %v371_v23, %v370_v24 }
 0x283   :  { %v374_v18 = vsel %vm109_vm5, %v373_v25, %v372_v17 }
 0x284   :  { %v376_v29 = vsel %vm111_vm6, %v375_v26, %v374_v18 }
 0x285   :  { %v378_v31 = vsel %vm113_vm7, %v377_v28, %v376_v29 }
 0x286   :  { %380 = vst.msk [vmem:[%s556_s2] sm:$0xff] %vm34_vm0, %v378_v31 }

</bundles_post_ra>
